<compile_context>
chip_gen: v7x
topology: tpu7x:2x2x1
jax: 0.10.0
libtpu: 0.0.40
codegen_flags: <defaults>
</compile_context>

<pallas_src>
import functools

import jax
import jax.numpy as jnp
from jax.experimental import pallas as pl
from jax.experimental.pallas import tpu as pltpu

_HALO = 128  # halo strip width (lane-aligned); supports kernel_size up to 257


def _dsconv_kernel(xl_ref, xm_ref, xr_ref, scale_ref, shift_ref, dw_w_ref,
                   dw_b_ref, pw_w_ref, pw_b_ref, o_ref, *, L, K, P, LT):
    t = pl.program_id(1)
    c_in = xm_ref.shape[1]

    scale = scale_ref[...]
    shift = shift_ref[...]

    # BatchNorm folded to a per-channel affine, applied only to columns whose
    # global position lies in [0, L); everything else (left/right edges,
    # clamped halo fetches, the padded tail) must behave like the conv's zero
    # padding *after* BN, i.e. exactly 0.
    #   Main tile: positions t*LT + j are always >= 0 -> only the `< L` check.
    xm = xm_ref[0].astype(jnp.float32)
    pos_m = t * LT + jax.lax.broadcasted_iota(jnp.int32, (c_in, LT), 1)
    ym = jnp.where(pos_m < L, xm * scale + shift, 0.0)

    #   Halo strips (128 wide): full validity check (clamped fetches land here).
    xl = xl_ref[0].astype(jnp.float32)
    pos_l = (t * LT - _HALO) + jax.lax.broadcasted_iota(jnp.int32, (c_in, _HALO), 1)
    yl = jnp.where((pos_l >= 0) & (pos_l < L), xl * scale + shift, 0.0)

    xr = xr_ref[0].astype(jnp.float32)
    pos_r = (t + 1) * LT + jax.lax.broadcasted_iota(jnp.int32, (c_in, _HALO), 1)
    yr = jnp.where(pos_r < L, xr * scale + shift, 0.0)

    # Working slab [left halo | tile | right halo]. (A single overlapping
    # element-offset window or a pltpu.roll-based tap path would avoid this
    # copy; the proven slab path is kept because the kernel is HBM-bound on all
    # three generations and the copy stays hidden under the tile DMA.)
    y = jnp.concatenate([yl, ym, yr], axis=-1)          # (C_in, LT + 2*_HALO)

    # Depthwise conv: acc[c, j] = sum_k w[c, k] * y[c, j + k - P] + b[c].
    acc = jnp.zeros((c_in, LT), jnp.float32)
    for k in range(K):
        off = _HALO - P + k
        acc = acc + y[:, off:off + LT] * dw_w_ref[:, k:k + 1]
    acc = acc + dw_b_ref[...]

    # Pointwise 1x1 conv on the MXU: (C_out, C_in) @ (C_in, LT) + bias.
    out = jnp.dot(pw_w_ref[...], acc, preferred_element_type=jnp.float32)
    out = out + pw_b_ref[...]
    o_ref[0] = out.astype(o_ref.dtype)


def _select_tile_and_vmem(L, C_in, C_out, K, l_tile, itemsize):
    """Largest lane-dense L tile that fits the VMEM budget of the current TPU
    generation (v5e/v6e: 128 MiB, v7x: 64 MiB per TensorCore)."""
    try:
        vmem_cap = int(pltpu.get_tpu_info().vmem_capacity_bytes)
    except Exception:
        vmem_cap = 64 << 20          # v7x per-core budget: safe everywhere
    itm = max(int(itemsize), 4)

    l128 = ((L + 127) // 128) * 128
    lt_cap = max(128, (min(int(l_tile), l128) // 128) * 128)

    def footprint(lt):
        slab = C_in * (lt + 2 * _HALO)
        pipeline = 2 * (slab + C_out * lt) * itm             # double-buffered DMA tiles
        temps = (3 * slab + C_in * lt + 2 * C_out * lt) * 4  # slab/taps/acc/matmul (f32)
        pars = (C_in * (K + 3) + C_out * (C_in + 1)) * 4
        return pipeline + temps + pars

    budget = int(vmem_cap * 0.55)
    LT = lt_cap
    while LT > 128 and footprint(LT) > budget:
        LT -= 128

    vmem_limit = int(min(max(2 * footprint(LT) + (4 << 20), 32 << 20),
                         int(vmem_cap * 0.9)))
    return LT, vmem_limit


def depthwise_separable_conv1d(x, params, *, kernel_size, l_tile=2048):
    """x: (B, C_in, L) -> (B, C_out, L).  Eval-mode BN -> depthwise -> pointwise."""
    # TODO(synk): training-mode BatchNorm (batch statistics + running-stat
    # updates) is not implemented; this kernel matches the eval-mode forward.
    B, C_in, L = x.shape
    K = int(kernel_size)
    assert K % 2 == 1, "DepthwiseSeparableConv1d requires odd kernel_size"
    P = (K - 1) // 2
    assert P <= _HALO, "kernel_size too large for the 128-wide halo strips"

    gamma, beta = params["gamma"], params["beta"]
    run_mean, run_var, eps = params["run_mean"], params["run_var"], params["eps"]
    dw_w, dw_b = params["dw_w"], params["dw_b"]          # (C_in, K), (C_in,)
    pw_w, pw_b = params["pw_w"], params["pw_b"]          # (C_out, C_in), (C_out,)
    C_out = pw_w.shape[0]

    # Fold BN (inference mode) into a per-channel affine.
    inv_std = jax.lax.rsqrt(run_var.astype(jnp.float32) + eps)
    scale = (gamma * inv_std).reshape(C_in, 1).astype(jnp.float32)
    shift = (beta - run_mean * gamma * inv_std).reshape(C_in, 1).astype(jnp.float32)

    itemsize = jnp.dtype(x.dtype).itemsize
    LT, vmem_limit = _select_tile_and_vmem(L, C_in, C_out, K, l_tile, itemsize)

    # Pad L up to a multiple of LT (no-op for typical SqueezeWave lengths); the
    # in-kernel validity mask + the final [:, :, :L] slice make tail columns
    # harmless, so LT never has to divide anything -> no small-tile fallback.
    n_lt = -(-L // LT)
    Lp = n_lt * LT
    xp = x if Lp == L else jnp.pad(x, ((0, 0), (0, 0), (0, Lp - L)))

    r = LT // 128            # 128-wide blocks per tile (for halo index maps)
    n128 = Lp // 128

    kernel = functools.partial(_dsconv_kernel, L=L, K=K, P=P, LT=LT)

    cost = pl.CostEstimate(
        flops=2 * B * Lp * C_in * (K + C_out),
        transcendentals=0,
        bytes_accessed=(B * C_in * Lp                      # x (main tiles)
                        + 2 * B * C_in * _HALO * n_lt      # halo strips
                        + B * C_out * Lp) * itemsize,      # output
    )

    out = pl.pallas_call(
        kernel,
        out_shape=jax.ShapeDtypeStruct((B, C_out, Lp), x.dtype),
        grid_spec=pltpu.PrefetchScalarGridSpec(
            num_scalar_prefetch=0,
            grid=(B, n_lt),
            in_specs=[
                # left halo strip, current tile, right halo strip (same array x)
                pl.BlockSpec((1, C_in, _HALO),
                             lambda b, t: (b, 0, jnp.maximum(t * r - 1, 0))),
                # TODO(synk): pipeline_mode=pl.Buffered(3) on the main spec is a
                # small extra win on v5e once uniformly supported.
                pl.BlockSpec((1, C_in, LT), lambda b, t: (b, 0, t)),
                pl.BlockSpec((1, C_in, _HALO),
                             lambda b, t: (b, 0, jnp.minimum((t + 1) * r,
                                                             n128 - 1))),
                pl.BlockSpec((C_in, 1), lambda b, t: (0, 0)),      # BN scale
                pl.BlockSpec((C_in, 1), lambda b, t: (0, 0)),      # BN shift
                pl.BlockSpec((C_in, K), lambda b, t: (0, 0)),      # dw weight
                pl.BlockSpec((C_in, 1), lambda b, t: (0, 0)),      # dw bias
                pl.BlockSpec((C_out, C_in), lambda b, t: (0, 0)),  # pw weight
                pl.BlockSpec((C_out, 1), lambda b, t: (0, 0)),     # pw bias
            ],
            out_specs=pl.BlockSpec((1, C_out, LT), lambda b, t: (b, 0, t)),
        ),
        compiler_params=pltpu.CompilerParams(
            # Both axes parallel: the (B, n_lt) grid shards across v7x's 2 TCs.
            dimension_semantics=("parallel", "parallel"),
            vmem_limit_bytes=vmem_limit,
        ),
        cost_estimate=cost,
    )(xp, xp, xp, scale, shift, dw_w, dw_b.reshape(C_in, 1),
      pw_w, pw_b.reshape(C_out, 1))
    return out[:, :, :L]


def _reference(x, params, *, kernel_size):
    """Pure-JAX reference mirroring the PyTorch forward (eval-mode BN)."""
    K = kernel_size
    P = (K - 1) // 2
    B, C_in, L = x.shape
    inv_std = 1.0 / jnp.sqrt(params["run_var"] + params["eps"])
    y = (x - params["run_mean"][None, :, None]) * inv_std[None, :, None]
    y = y * params["gamma"][None, :, None] + params["beta"][None, :, None]
    yp = jnp.pad(y, ((0, 0), (0, 0), (P, P)))
    dw = sum(yp[:, :, k:k + L] * params["dw_w"][None, :, k, None] for k in range(K))
    dw = dw + params["dw_b"][None, :, None]
    pw = jnp.einsum("oc,bcl->bol", params["pw_w"], dw) + params["pw_b"][None, :, None]
    return pw


if __name__ == "__main__":
    B, C_in, C_out, K = 2, 8, 6, 3

    key = jax.random.PRNGKey(0)
    ks = jax.random.split(key, 8)

    params = {
        "gamma": jax.random.normal(ks[1], (C_in,), jnp.float32) * 0.1 + 1.0,
        "beta": jax.random.normal(ks[2], (C_in,), jnp.float32) * 0.1,
        "run_mean": jax.random.normal(ks[3], (C_in,), jnp.float32) * 0.1,
        "run_var": jnp.abs(jax.random.normal(ks[4], (C_in,), jnp.float32)) * 0.1 + 1.0,
        "eps": jnp.float32(1e-5),
        # depthwise Conv1d weight (C_in, 1, K) squeezed to (C_in, K), plus bias
        "dw_w": jax.random.normal(ks[5], (C_in, K), jnp.float32) * 0.3,
        "dw_b": jax.random.normal(ks[6], (C_in,), jnp.float32) * 0.1,
        # pointwise Conv1d weight (C_out, C_in, 1) squeezed to (C_out, C_in), plus bias
        "pw_w": jax.random.normal(ks[7], (C_out, C_in), jnp.float32) * 0.3,
        "pw_b": jnp.linspace(-0.1, 0.1, C_out, dtype=jnp.float32),
    }

    # Three configs: default tile (single padded tile), forced small tiles
    # (exercises cross-tile halos + boundary masking), and a non-128-multiple
    # length with a >128-column padded tail in the last tile.
    for L, l_tile in ((300, 2048), (300, 128), (260, 256)):
        x = jax.random.normal(ks[0], (B, C_in, L), jnp.float32)
        out = depthwise_separable_conv1d(x, params, kernel_size=K, l_tile=l_tile)
        out = jax.block_until_ready(out)
        ref = _reference(x, params, kernel_size=K)
        assert out.shape == (B, C_out, L)
        assert jnp.allclose(out, ref, atol=3e-5, rtol=3e-5), (
            f"mismatch vs reference (L={L}, l_tile={l_tile})")

    print("KERNEL_OK")
</pallas_src>

<mosaic_0001>
module attributes {stable_mosaic.version = 11 : i64} {
  func.func @_dsconv_kernel(%arg0: i32, %arg1: i32, %arg2: memref<1x8x128xf32, #tpu.memory_space<vmem>>, %arg3: memref<1x8x384xf32, #tpu.memory_space<vmem>>, %arg4: memref<1x8x128xf32, #tpu.memory_space<vmem>>, %arg5: memref<8x1xf32, #tpu.memory_space<vmem>>, %arg6: memref<8x1xf32, #tpu.memory_space<vmem>>, %arg7: memref<8x3xf32, #tpu.memory_space<vmem>>, %arg8: memref<8x1xf32, #tpu.memory_space<vmem>>, %arg9: memref<6x8xf32, #tpu.memory_space<vmem>>, %arg10: memref<6x1xf32, #tpu.memory_space<vmem>>, %arg11: memref<1x6x384xf32, #tpu.memory_space<vmem>>) attributes {dimension_semantics = [#tpu.dimension_semantics<parallel>, #tpu.dimension_semantics<parallel>], iteration_bounds = array<i64: 2, 1>, scalar_prefetch = 0 : i64, scratch_operands = 0 : i64, tpu.core_type = #tpu.core_type<tc>, window_params = [{transform_indices = @transform_0, window_bounds = array<i64: 1, 8, 128>}, {transform_indices = @transform_1, window_bounds = array<i64: 1, 8, 384>}, {transform_indices = @transform_2, window_bounds = array<i64: 1, 8, 128>}, {pipeline_mode = #tpu.pipeline_mode<synchronous>, transform_indices = @transform_3, window_bounds = array<i64: 8, 1>}, {pipeline_mode = #tpu.pipeline_mode<synchronous>, transform_indices = @transform_4, window_bounds = array<i64: 8, 1>}, {pipeline_mode = #tpu.pipeline_mode<synchronous>, transform_indices = @transform_5, window_bounds = array<i64: 8, 3>}, {pipeline_mode = #tpu.pipeline_mode<synchronous>, transform_indices = @transform_6, window_bounds = array<i64: 8, 1>}, {pipeline_mode = #tpu.pipeline_mode<synchronous>, transform_indices = @transform_7, window_bounds = array<i64: 6, 8>}, {pipeline_mode = #tpu.pipeline_mode<synchronous>, transform_indices = @transform_8, window_bounds = array<i64: 6, 1>}, {transform_indices = @transform_9, window_bounds = array<i64: 1, 6, 384>}]} {
    %c0 = arith.constant 0 : index
    %c0_0 = arith.constant 0 : index
    %0 = vector.load %arg5[%c0, %c0_0] : memref<8x1xf32, #tpu.memory_space<vmem>>, vector<8x1xf32>
    %c0_1 = arith.constant 0 : index
    %c0_2 = arith.constant 0 : index
    %1 = vector.load %arg6[%c0_1, %c0_2] : memref<8x1xf32, #tpu.memory_space<vmem>>, vector<8x1xf32>
    %c0_3 = arith.constant 0 : index
    %c0_4 = arith.constant 0 : index
    %c0_5 = arith.constant 0 : index
    %2 = vector.load %arg3[%c0_3, %c0_4, %c0_5] : memref<1x8x384xf32, #tpu.memory_space<vmem>>, vector<1x8x384xf32>
    %3 = vector.shape_cast %2 : vector<1x8x384xf32> to vector<8x384xf32>
    %c384_i32 = arith.constant 384 : i32
    %4 = arith.muli %arg1, %c384_i32 : i32
    %5 = tpu.iota {dimensions = array<i32: 1>} : vector<8x384xi32>
    %6 = vector.broadcast %4 : i32 to vector<8x384xi32>
    %7 = arith.addi %6, %5 : vector<8x384xi32>
    %c300_i32 = arith.constant 300 : i32
    %8 = vector.broadcast %c300_i32 : i32 to vector<8x384xi32>
    %9 = arith.cmpi slt, %7, %8 : vector<8x384xi32>
    %10 = vector.broadcast %0 : vector<8x1xf32> to vector<8x384xf32>
    %11 = arith.mulf %3, %10 : vector<8x384xf32>
    %12 = vector.broadcast %1 : vector<8x1xf32> to vector<8x384xf32>
    %13 = arith.addf %11, %12 : vector<8x384xf32>
    %cst = arith.constant 0.000000e+00 : f32
    %14 = vector.broadcast %cst : f32 to vector<8x384xf32>
    %15 = arith.select %9, %13, %14 : vector<8x384xi1>, vector<8x384xf32>
    %c0_6 = arith.constant 0 : index
    %c0_7 = arith.constant 0 : index
    %c0_8 = arith.constant 0 : index
    %16 = vector.load %arg2[%c0_6, %c0_7, %c0_8] : memref<1x8x128xf32, #tpu.memory_space<vmem>>, vector<1x8x128xf32>
    %17 = vector.shape_cast %16 : vector<1x8x128xf32> to vector<8x128xf32>
    %c384_i32_9 = arith.constant 384 : i32
    %18 = arith.muli %arg1, %c384_i32_9 : i32
    %c128_i32 = arith.constant 128 : i32
    %19 = arith.subi %18, %c128_i32 : i32
    %20 = tpu.iota {dimensions = array<i32: 1>} : vector<8x128xi32>
    %21 = vector.broadcast %19 : i32 to vector<8x128xi32>
    %22 = arith.addi %21, %20 : vector<8x128xi32>
    %c0_i32 = arith.constant 0 : i32
    %23 = vector.broadcast %c0_i32 : i32 to vector<8x128xi32>
    %24 = arith.cmpi sge, %22, %23 : vector<8x128xi32>
    %c300_i32_10 = arith.constant 300 : i32
    %25 = vector.broadcast %c300_i32_10 : i32 to vector<8x128xi32>
    %26 = arith.cmpi slt, %22, %25 : vector<8x128xi32>
    %27 = arith.andi %24, %26 : vector<8x128xi1>
    %28 = vector.broadcast %0 : vector<8x1xf32> to vector<8x128xf32>
    %29 = arith.mulf %17, %28 : vector<8x128xf32>
    %30 = vector.broadcast %1 : vector<8x1xf32> to vector<8x128xf32>
    %31 = arith.addf %29, %30 : vector<8x128xf32>
    %cst_11 = arith.constant 0.000000e+00 : f32
    %32 = vector.broadcast %cst_11 : f32 to vector<8x128xf32>
    %33 = arith.select %27, %31, %32 : vector<8x128xi1>, vector<8x128xf32>
    %c0_12 = arith.constant 0 : index
    %c0_13 = arith.constant 0 : index
    %c0_14 = arith.constant 0 : index
    %34 = vector.load %arg4[%c0_12, %c0_13, %c0_14] : memref<1x8x128xf32, #tpu.memory_space<vmem>>, vector<1x8x128xf32>
    %35 = vector.shape_cast %34 : vector<1x8x128xf32> to vector<8x128xf32>
    %c1_i32 = arith.constant 1 : i32
    %36 = arith.addi %arg1, %c1_i32 : i32
    %c384_i32_15 = arith.constant 384 : i32
    %37 = arith.muli %36, %c384_i32_15 : i32
    %38 = tpu.iota {dimensions = array<i32: 1>} : vector<8x128xi32>
    %39 = vector.broadcast %37 : i32 to vector<8x128xi32>
    %40 = arith.addi %39, %38 : vector<8x128xi32>
    %c300_i32_16 = arith.constant 300 : i32
    %41 = vector.broadcast %c300_i32_16 : i32 to vector<8x128xi32>
    %42 = arith.cmpi slt, %40, %41 : vector<8x128xi32>
    %43 = vector.broadcast %0 : vector<8x1xf32> to vector<8x128xf32>
    %44 = arith.mulf %35, %43 : vector<8x128xf32>
    %45 = vector.broadcast %1 : vector<8x1xf32> to vector<8x128xf32>
    %46 = arith.addf %44, %45 : vector<8x128xf32>
    %cst_17 = arith.constant 0.000000e+00 : f32
    %47 = vector.broadcast %cst_17 : f32 to vector<8x128xf32>
    %48 = arith.select %42, %46, %47 : vector<8x128xi1>, vector<8x128xf32>
    %49 = tpu.concatenate %33, %15, %48 in 1 : vector<8x128xf32>, vector<8x384xf32>, vector<8x128xf32> -> vector<8x640xf32>
    %cst_18 = arith.constant 0.000000e+00 : f32
    %50 = vector.broadcast %cst_18 : f32 to vector<8x384xf32>
    %51 = vector.extract_strided_slice %49 {offsets = [0, 127], sizes = [8, 384], strides = [1, 1]} : vector<8x640xf32> to vector<8x384xf32>
    %c0_19 = arith.constant 0 : index
    %c0_20 = arith.constant 0 : index
    %52 = vector.load %arg7[%c0_19, %c0_20] : memref<8x3xf32, #tpu.memory_space<vmem>>, vector<8x1xf32>
    %53 = vector.broadcast %52 : vector<8x1xf32> to vector<8x384xf32>
    %54 = arith.mulf %51, %53 : vector<8x384xf32>
    %55 = arith.addf %50, %54 : vector<8x384xf32>
    %56 = vector.extract_strided_slice %49 {offsets = [0, 128], sizes = [8, 384], strides = [1, 1]} : vector<8x640xf32> to vector<8x384xf32>
    %c0_21 = arith.constant 0 : index
    %c1 = arith.constant 1 : index
    %57 = vector.load %arg7[%c0_21, %c1] : memref<8x3xf32, #tpu.memory_space<vmem>>, vector<8x1xf32>
    %58 = vector.broadcast %57 : vector<8x1xf32> to vector<8x384xf32>
    %59 = arith.mulf %56, %58 : vector<8x384xf32>
    %60 = arith.addf %55, %59 : vector<8x384xf32>
    %61 = vector.extract_strided_slice %49 {offsets = [0, 129], sizes = [8, 384], strides = [1, 1]} : vector<8x640xf32> to vector<8x384xf32>
    %c0_22 = arith.constant 0 : index
    %c2 = arith.constant 2 : index
    %62 = vector.load %arg7[%c0_22, %c2] : memref<8x3xf32, #tpu.memory_space<vmem>>, vector<8x1xf32>
    %63 = vector.broadcast %62 : vector<8x1xf32> to vector<8x384xf32>
    %64 = arith.mulf %61, %63 : vector<8x384xf32>
    %65 = arith.addf %60, %64 : vector<8x384xf32>
    %c0_23 = arith.constant 0 : index
    %c0_24 = arith.constant 0 : index
    %66 = vector.load %arg8[%c0_23, %c0_24] : memref<8x1xf32, #tpu.memory_space<vmem>>, vector<8x1xf32>
    %67 = vector.broadcast %66 : vector<8x1xf32> to vector<8x384xf32>
    %68 = arith.addf %65, %67 : vector<8x384xf32>
    %c0_25 = arith.constant 0 : index
    %c0_26 = arith.constant 0 : index
    %69 = vector.load %arg9[%c0_25, %c0_26] : memref<6x8xf32, #tpu.memory_space<vmem>>, vector<6x8xf32>
    %cst_27 = arith.constant dense<0.000000e+00> : vector<6x384xf32>
    %70 = tpu.matmul %69, %68, %cst_27 {dimension_numbers = #tpu.dot_dimension_numbers<[1], [0], [0], [1], [0, 0, 1, 1], [], []>} : vector<6x8xf32>, vector<8x384xf32>, vector<6x384xf32> -> vector<6x384xf32>
    %c0_28 = arith.constant 0 : index
    %c0_29 = arith.constant 0 : index
    %71 = vector.load %arg10[%c0_28, %c0_29] : memref<6x1xf32, #tpu.memory_space<vmem>>, vector<6x1xf32>
    %72 = vector.broadcast %71 : vector<6x1xf32> to vector<6x384xf32>
    %73 = arith.addf %70, %72 : vector<6x384xf32>
    %c0_30 = arith.constant 0 : index
    %c0_31 = arith.constant 0 : index
    %c0_32 = arith.constant 0 : index
    %74 = vector.load %arg11[%c0_30, %c0_31, %c0_32] : memref<1x6x384xf32, #tpu.memory_space<vmem>>, vector<1x6x384xf32>
    %75 = vector.shape_cast %74 : vector<1x6x384xf32> to vector<6x384xf32>
    %76 = vector.shape_cast %73 : vector<6x384xf32> to vector<1x6x384xf32>
    tpu.vector_store %arg11[%c0_30, %c0_31, %c0_32], %76 {strides = array<i32>} : memref<1x6x384xf32, #tpu.memory_space<vmem>>, vector<1x6x384xf32>,
    return
  }
  func.func @transform_0(%arg0: i32, %arg1: i32) -> (i32, i32, i32) {
    %c3_i32 = arith.constant 3 : i32
    %0 = arith.muli %arg1, %c3_i32 : i32
    %c1_i32 = arith.constant 1 : i32
    %1 = arith.subi %0, %c1_i32 : i32
    %c0_i32 = arith.constant 0 : i32
    %2 = arith.maxsi %1, %c0_i32 : i32
    %c0_i32_0 = arith.constant 0 : i32
    %c0_i32_1 = arith.constant 0 : i32
    return %arg0, %c0_i32_0, %2 : i32, i32, i32
  }
  func.func @transform_1(%arg0: i32, %arg1: i32) -> (i32, i32, i32) {
    %c0_i32 = arith.constant 0 : i32
    %c0_i32_0 = arith.constant 0 : i32
    return %arg0, %c0_i32, %arg1 : i32, i32, i32
  }
  func.func @transform_2(%arg0: i32, %arg1: i32) -> (i32, i32, i32) {
    %c1_i32 = arith.constant 1 : i32
    %0 = arith.addi %arg1, %c1_i32 : i32
    %c3_i32 = arith.constant 3 : i32
    %1 = arith.muli %0, %c3_i32 : i32
    %c2_i32 = arith.constant 2 : i32
    %2 = arith.minsi %1, %c2_i32 : i32
    %c0_i32 = arith.constant 0 : i32
    %c0_i32_0 = arith.constant 0 : i32
    return %arg0, %c0_i32, %2 : i32, i32, i32
  }
  func.func @transform_3(%arg0: i32, %arg1: i32) -> (i32, i32) {
    %c0_i32 = arith.constant 0 : i32
    %c0_i32_0 = arith.constant 0 : i32
    %c0_i32_1 = arith.constant 0 : i32
    return %c0_i32, %c0_i32_0 : i32, i32
  }
  func.func @transform_4(%arg0: i32, %arg1: i32) -> (i32, i32) {
    %c0_i32 = arith.constant 0 : i32
    %c0_i32_0 = arith.constant 0 : i32
    %c0_i32_1 = arith.constant 0 : i32
    return %c0_i32, %c0_i32_0 : i32, i32
  }
  func.func @transform_5(%arg0: i32, %arg1: i32) -> (i32, i32) {
    %c0_i32 = arith.constant 0 : i32
    %c0_i32_0 = arith.constant 0 : i32
    %c0_i32_1 = arith.constant 0 : i32
    return %c0_i32, %c0_i32_0 : i32, i32
  }
  func.func @transform_6(%arg0: i32, %arg1: i32) -> (i32, i32) {
    %c0_i32 = arith.constant 0 : i32
    %c0_i32_0 = arith.constant 0 : i32
    %c0_i32_1 = arith.constant 0 : i32
    return %c0_i32, %c0_i32_0 : i32, i32
  }
  func.func @transform_7(%arg0: i32, %arg1: i32) -> (i32, i32) {
    %c0_i32 = arith.constant 0 : i32
    %c0_i32_0 = arith.constant 0 : i32
    %c0_i32_1 = arith.constant 0 : i32
    return %c0_i32, %c0_i32_0 : i32, i32
  }
  func.func @transform_8(%arg0: i32, %arg1: i32) -> (i32, i32) {
    %c0_i32 = arith.constant 0 : i32
    %c0_i32_0 = arith.constant 0 : i32
    %c0_i32_1 = arith.constant 0 : i32
    return %c0_i32, %c0_i32_0 : i32, i32
  }
  func.func @transform_9(%arg0: i32, %arg1: i32) -> (i32, i32, i32) {
    %c0_i32 = arith.constant 0 : i32
    %c0_i32_0 = arith.constant 0 : i32
    return %arg0, %c0_i32, %arg1 : i32, i32, i32
  }
}

</mosaic_0001>

<bundles_post_ra>
// kernel: tpu_custom_call.1
= control target key start
LH: loop header
LB: loop body
LE: loop exit
PB: predicated region body
PF: predicated region fallthrough
CT: control target
= control target key end

     0   :  { %s1416_s0 = inlined_call_operand.hbm [shape: f32[2,8,384], index: 0, kind: input, shape index: {}]   ;;  %s1417_s1 = inlined_call_operand.vmem [shape: f32[2,8,384], index: 1, kind: input, shape index: {}]   ;;  %s1418_s2 = inlined_call_operand.hbm [shape: f32[2,8,384], index: 2, kind: input, shape index: {}]   ;;  %s1419_s3 = inlined_call_operand.vmem [shape: f32[8,1], index: 3, kind: input, shape index: {}]   ;;  %s1420_s4 = inlined_call_operand.vmem [shape: f32[8,1], index: 4, kind: input, shape index: {}]   ;;  %s1421_s5 = inlined_call_operand.vmem [shape: f32[8,3], index: 5, kind: input, shape index: {}]   ;;  %s1422_s6 = inlined_call_operand.vmem [shape: f32[8,1], index: 6, kind: input, shape index: {}]   ;;  %s1423_s7 = inlined_call_operand.vmem [shape: f32[6,8], index: 7, kind: input, shape index: {}]   ;;  %s1424_s8 = inlined_call_operand.vmem [shape: f32[6,1], index: 8, kind: input, shape index: {}]   ;;  %s1425_s9 = inlined_call_operand.vmem [shape: f32[2,6,384], index: 9, kind: output, shape index: {}]  }
   0x1   :  { %1428 = sst [smem:[#allocation8_spill]] %s1416_s0 }
   0x2   :  { %14 = vsyncpa [#allocation3], 0 }
   0x3   :  { %16 = vsyncpa [#allocation3 + $0x1], 0 }
   0x4   :  { %17 = vsyncpa [#allocation5], 0 }
   0x5   :  { %19 = vsyncpa [#allocation5 + $0x1], 0  ;;  %s1213_s30 = smov 0   ;;  %s1215_s10 = smov 0  }
   0x6   :  { %s1217_s11 = smov 0   ;;  %s1219_s12 = smov 0  }
   0x7   :  { %s1221_s13 = smov 0   ;;  %s1223_s14 = smov 0  }
   0x8 LB: > { %s935_s15 = sadd.s32 4294967295, %s1151_s14   ;;  %s37_s16 = sadd.s32 1, %s1147_s13  ;;  %s1151_s14 = sphi %s1223_s14, %s25_s14   ;;  %s1147_s13 = sphi %s1221_s13, %s1442_s13   ;;  %s1143_s12 = sphi %s1219_s12, %s1441_s12   ;;  %s1139_s11 = sphi %s1217_s11, %s1440_s11   ;;  %s1135_s10 = sphi %s1215_s10, %s1439_s10   ;;  %s1131_s30 = sphi %s1213_s30, %s1438_s30  }
   0x9   : > { %p39_p0 = scmp.ge.s32.totalorder %s37_s16, 2  ;;  %s54_s17 = sadd.s32 1, %s1139_s11 }
   0xa   : > { %p61_p1 = scmp.ne.s32.totalorder %s1139_s11, %s1135_s10  ;;  %p62_p2 = scmp.eq.s32.totalorder %s1151_s14, 0 }
   0xb   : > { %s1444_s16 = smov (%p39_p0, %s37_s16), 0  ;;  %p67_p4 = scmp.ne.s32.totalorder %s1135_s10, %s1131_s30 }
   0xc   : > { %p1249_p3 = por %p62_p2, %p61_p1  ;;  %s49_s19 = ssub.s32 %s1147_s13, %s1444_s16 }
   0xd   : > { %p68_p5 = scmp.eq.s32.totalorder %s935_s15, 0  ;;  %p52_p6 = scmp.eq.s32.totalorder %s49_s19, 0 }
   0xe   : > { %p975_p8 = scmp.lt.s32.totalorder %s1151_s14, 2  ;;  %s1265_s22 = sand.u32 1, %s1139_s11  }
   0xf   : > { %p1256_p7 = por %p68_p5, %p67_p4  ;;  %s961_s23 = smul.u32 384, %s1147_s13 }
  0x10   : > { %s1262_s21 = scalar_select %p52_p6, %s1139_s11, %s54_s17  }
  0x11   : > { %s1430_s20 = scalar_select %p1256_p7, 1, 0 }
  0x12   : > { %s1426_s24 = sshll.u32 %s1265_s22, 3  ;;  %s1431_s0 = sld [smem:[#allocation8_spill]] }
  0x13   : > { %s331_s28 = scalar_lea.vmem [#allocation2], %s1426_s24  ;;  %p1280_p9 = pnand %p975_p8, %p1249_p3 }
  0x14   : > { %s344_s29 = sshll.u32 %s331_s28, 4  ;;  %s328_s15 = scalar_lea.sflag [#allocation3], %s1265_s22  ;;  %s1284_s29 = int_to_ptr.vmem [resolvable:$true] %s344_s29 }
  0x15   : > { %p1039_p12 = pneg %p1280_p9 }
  0x18   : > { %s1274_s27 = scalar_lea.hbm %s1431_s0, %s961_s23  ;;  %s1042_s25 = scalar_lea.hbm %s1431_s0, 768 }
  0x19   : > { %s1037_s17 = scalar_lea.hbm %s1274_s27, 128  ;;  %p1043_p1 = scmp.lt.u32.totalorder %s1274_s27, %s1431_s0 }
  0x1a   : > { %p1038_p11 = scmp.ne.s32.totalorder %s1274_s27, %s1037_s17  ;;  %p1044_p2 = scmp.lt.u32.totalorder %s1042_s25, %s1037_s17 }
  0x1b   : > { %p1046_p4 = scmp.lt.u32.totalorder %s1037_s17, %s1274_s27 }
  0x1c   : > { %p1040_p13 = pnand %p1039_p12, %p1038_p11  ;;  %p1045_p3 = por %p1044_p2, %p1043_p1 }
  0x1e   : > { %p1041_p0 = pneg %p1040_p13  ;;  %p1047_p5 = por %p1046_p4, %p1045_p3 }
  0x20   : > { %p1048_p6 = pnand %p1047_p5, %p1041_p0 }
  0x22   : > { %1051 = shalt.err (!%p1048_p6)
}
  0x23   : > { %s1052_s24 = scalar_lea.vmem %s1284_s29, 128  ;;  %s1153_s19 = smov [#allocation2]  }
  0x24   : > { %p1053_p8 = scmp.ne.s32.totalorder %s1284_s29, %s1052_s24  ;;  %s1057_s18 = sshll.u32 %s1153_s19, 4  ;;  %s1058_s18 = int_to_ptr.vmem [resolvable:$false] %s1057_s18 }
  0x25   : > { %s1059_s26 = scalar_lea.vmem %s1058_s18, 256  ;;  %p1060_p10 = scmp.lt.s32.totalorder %s1284_s29, %s1058_s18 }
  0x26   : > { %p1055_p11 = pnand %p1053_p8, %p1039_p12  ;;  %p1061_p1 = scmp.lt.s32.totalorder %s1059_s26, %s1052_s24 }
  0x28   : > { %p1056_p13 = pneg %p1055_p11  ;;  %p1062_p2 = por %p1061_p1, %p1060_p10 }
  0x2a   : > { %p1063_p3 = pnand %p1062_p2, %p1056_p13 }
  0x2c   : > { %1066 = shalt.err (!%p1063_p3)
}
  0x2d   : > { %971 = dma.hbm_to_vmem [thread:$0]  (!%p1280_p9), %s1274_s27, 128, %s1284_s29, %s328_s15  }
  0x2e   : > { %p386_p0 = scmp.lt.s32.totalorder %s1151_s14, 3  ;;  %s953_s17 = sadd.s32 256, %s961_s23 }
  0x2f   : > { %p1433_p4 = scmp.ge.s32.totalorder %s1151_s14, 1  ;;  %s1325_s19 = scalar_lea.hbm %s1418_s2, %s953_s17 }
  0x30   : > { %s1435_s18 = sshll.u32 %s1265_s22, 3  ;;  %s365_s29 = scalar_lea.sflag [#allocation5], %s1265_s22 }
  0x31   : > { %p1318_p5 = pnand %p1433_p4, %p386_p0  ;;  %s368_s26 = scalar_lea.vmem [#allocation4], %s1435_s18 }
  0x32   : > { %s381_s27 = sshll.u32 %s368_s26, 4  ;;  %s1067_s23 = scalar_lea.hbm %s1325_s19, 128  ;;  %s382_s27 = int_to_ptr.vmem [resolvable:$true] %s381_s27 }
  0x33   : > { %s1434_s24 = scalar_select %p1318_p5, 1, 0 }
  0x34   : > { %p1068_p10 = scmp.ne.s32.totalorder %s1325_s19, %s1067_s23  ;;  %s1072_s17 = scalar_lea.hbm %s1418_s2, 768 }
  0x35   : > { %p1073_p11 = scmp.lt.u32.totalorder %s1325_s19, %s1418_s2  ;;  %p1074_p13 = scmp.lt.u32.totalorder %s1072_s17, %s1067_s23 }
  0x36   : > { %p1070_p6 = pnand %p1068_p10, %p1039_p12  ;;  %p1076_p2 = scmp.lt.u32.totalorder %s1067_s23, %s1325_s19 }
  0x37   : > { %p1075_p1 = por %p1074_p13, %p1073_p11 }
  0x38   : > { %p1071_p8 = pneg %p1070_p6 }
  0x39   : > { %p1077_p3 = por %p1076_p2, %p1075_p1 }
  0x3b   : > { %p1078_p0 = pnand %p1077_p3, %p1071_p8 }
  0x3d   : > { %1081 = shalt.err (!%p1078_p0)
}
  0x3e   : > { %s1082_s22 = scalar_lea.vmem %s382_s27, 128  ;;  %s1154_s18 = smov [#allocation4]  }
  0x3f   : > { %p1083_p4 = scmp.ne.s32.totalorder %s382_s27, %s1082_s22  ;;  %s1087_s0 = sshll.u32 %s1154_s18, 4  ;;  %s1088_s0 = int_to_ptr.vmem [resolvable:$false] %s1087_s0 }
  0x40   : > { %s1089_s26 = scalar_lea.vmem %s1088_s0, 256  ;;  %p1090_p7 = scmp.lt.s32.totalorder %s382_s27, %s1088_s0 }
  0x41   : > { %p1085_p10 = pnand %p1083_p4, %p1039_p12  ;;  %p1091_p5 = scmp.lt.s32.totalorder %s1089_s26, %s1082_s22 }
  0x43   : > { %p1086_p6 = pneg %p1085_p10  ;;  %p1092_p11 = por %p1091_p5, %p1090_p7 }
  0x45   : > { %p1093_p13 = pnand %p1092_p11, %p1086_p6 }
  0x47   : > { %1096 = shalt.err (!%p1093_p13)
}
  0x48   : > { %974 = dma.hbm_to_vmem [thread:$0]  (!%p1280_p9), %s1325_s19, 128, %s382_s27, %s365_s29  }
  0x49   : > { %p1436_p8 = scmp.ne.s32.totalorder %s1434_s24, 0 }
  0x4a   : > { %s392_s23 = sand.u32 (!%p1436_p8), 1, %s1135_s10   ;;  %p1437_p12 = scmp.ne.s32.totalorder (!%p1436_p8), %s1430_s20, 0 }
  0x4b   : > { %390 = sbr.rel (%p1436_p8) target bundleno = 689 (0x2b1), region = 56  ;;  %s393_s15 = scalar_lea.sflag (!%p1436_p8), [#allocation3], %s392_s23 }
  0x52   : > { %1122 = dma.done.wait (%p1437_p12), %s393_s15, 128  }
  0x53   : > { %1124 = vsyncadd (%p1437_p12), %s393_s15, 4294967168  ;;  %s402_s17 = scalar_lea.sflag [#allocation5], %s392_s23 }
  0x54   : > { %1126 = dma.done.wait (%p1437_p12), %s402_s17, 128  }
  0x55   : > { %1128 = vsyncadd (%p1437_p12), %s402_s17, 4294967168  ;;  %v1155_v0 = vmov 0   ;;  %v1156_v1 = vmov 1   ;;  %v486_v2 = vld [vmem:[%s1419_s3] sm:$0xff]  ;;  %v1157_v5 = vmov 2   ;;  %p463_p7 = scmp.lt.s32.totalorder %s1143_s12, 1  ;;  %v492_v7 = vlaneseq }
  0x56   : > { %1033 = vset.pattern.permute.xlu0 %v1155_v0  ;;  %1034 = vset.pattern.permute.xlu1 %v1156_v1  ;;  %v541_v3 = vld [vmem:[%s1421_s5] sm:$0xff]  ;;  %s1158_s23 = smov 127   ;;  %s1159_s15 = smov 126   ;;  %vm571_vm1 = vcmask 1039360   ;;  %vm602_vm2 = vcmask 1031168   ;;  %v1160_v44 = vmov 0.0  }
  0x57   : > { %505 = vperm.xlu0 %1033, %v486_v2   ;;  %556 = vperm.xlu1 %1034, %v541_v3   ;;  %v487_v4 = vld [vmem:[%s1420_s4] sm:$0xff]  ;;  %s1446_s12 = smov (!%p463_p7, %s1143_s12), 1  ;;  %v493_v11 = vand.u32 127, %v492_v7  ;;  %vm1161_vm3 = vmmov 0   ;;  %s1162_s17 = smov 1   ;;  %vm643_vm4 = vcmask 7168  }
  0x58   : > { %v614_v6 = vld [vmem:[%s1422_s6] sm:$0xff]  ;;  %s963_s22 = smul.u32 24, %s1446_s12  ;;  %718 = vmatprep.mubr.f32.mxu0 %v1160_v44  ;;  %956 = vmatprep.subr.mxu1 %v1160_v44  ;;  %vm650_vm5 = vcmask 64512  }
  0x59   : > { %v495_v17 = vadd.s32 256, %v493_v11  ;;  %958 = vmatprep.mubr.msk.f32.mxu1 %vm1161_vm3, %v1160_v44  ;;  %v625_v61 = vld [vmem:[%s1424_s8] sm:$0x3f] }
  0x5a   : > { %s470_s26 = scalar_lea.vmem %s1417_s1, %s963_s22  ;;  %s484_s20 = scalar_lea.vmem %s1425_s9, %s963_s22 }
  0x5b   : > { %513 = vperm.xlu0 %1033, %v487_v4   ;;  %1035 = vset.pattern.permute.xlu1 %v1157_v5  ;;  %v488_v8 = vld [vmem:[%s470_s26] sm:$0xff]  ;;  %v489_v9 = vld [vmem:[%s470_s26 + $0x8] sm:$0xff]  ;;  %v490_v13 = vld [vmem:[%s470_s26 + $0x10] sm:$0xff]  ;;  %vm502_vm0 = vcmp.lt.s32.totalorder %v495_v17, 300 }
  0x5c   : > { %583 = vperm.xlu1 %1035, %v541_v3  }
  0x5f   : > { %544 = vperm.xlu0 %1033, %v541_v3   ;;  %v624_v3 = vld [vmem:[%s1423_s7] sm:$0x3f] }
  0x60   : > { %1036 = vset.pattern.permute.xlu1 %v1155_v0 }
  0x61   : > { %617 = vperm.xlu1 %1036, %v614_v6  }
  0xd6   : > { %v506_v10 = vpop.permute.xlu0 %505  ;;  %v557_v12 = vpop.permute.xlu1 %556 }
  0xd7   : > { %v508_v14 = vmul.f32 %v506_v10, %v488_v8  ;;  %v509_v15 = vmul.f32 %v506_v10, %v489_v9  ;;  %v510_v20 = vmul.f32 %v506_v10, %v490_v13 }
  0xda   : > { %v514_v16 = vpop.permute.xlu0 %513 }
  0xdb   : > { %v516_v18 = vadd.f32 %v514_v16, %v508_v14  ;;  %v517_v19 = vadd.f32 %v514_v16, %v509_v15  ;;  %v518_v23 = vadd.f32 %v514_v16, %v510_v20  ;;  %v584_v24 = vpop.permute.xlu1 %583 }
  0xdc   : > { %v589_v30 = vmul.f32 0.0, %v584_v24 }
  0xdd   : > { %v560_v21 = vmul.f32 %v557_v12, %v517_v19  ;;  %v559_v22 = vmul.f32 %v557_v12, %v516_v18  ;;  %v586_v25 = vmul.f32 %v584_v24, %v516_v18  ;;  %v587_v26 = vmul.f32 %v584_v24, %v517_v19 }
  0xde   : > { %v521_v27 = vsel %vm502_vm0, %v518_v23, 0.0  ;;  %v545_v32 = vpop.permute.xlu0 %544 }
  0xdf   : > { %567 = vrot.lane.b32.xlu1 %v560_v21, %s1158_s23  ;;  %565 = vrot.lane.b32.xlu0 %v559_v22, %s1158_s23  ;;  %v588_v28 = vmul.f32 %v584_v24, %v521_v27  ;;  %v561_v29 = vmul.f32 %v557_v12, %v521_v27  ;;  %v548_v36 = vmul.f32 %v545_v32, %v516_v18  ;;  %v547_v37 = vmul.f32 0.0, %v545_v32 }
  0xe0   : > { %v618_v31 = vpop.permute.xlu1 %617  ;;  %v549_v47 = vmul.f32 %v545_v32, %v517_v19  ;;  %v550_v51 = vmul.f32 %v545_v32, %v521_v27 }
  0xe3   : > { %594 = vrot.lane.b32.xlu1 %v586_v25, %s1159_s15  ;;  %596 = vrot.lane.b32.xlu0 %v587_v26, %s1159_s15 }
  0xe7   : > { %598 = vrot.lane.b32.xlu1 %v588_v28, %s1159_s15  ;;  %569 = vrot.lane.b32.xlu0 %v561_v29, %s1158_s23 }
  0xeb   : > { %600 = vrot.lane.b32.xlu0 %v589_v30, %s1159_s15 }
 0x151   : > { %v568_v33 = vpop.permute.xlu1 %567  ;;  %v566_v34 = vpop.permute.xlu0 %565 }
 0x152   : > { %v572_v35 = vsel %vm571_vm1, %v566_v34, %v568_v33  ;;  %v578_v42 = vadd.f32 %v566_v34, %v547_v37 }
 0x153   : > { %v579_v38 = vadd.f32 %v572_v35, %v548_v36 }
 0x155   : > { %v595_v39 = vpop.permute.xlu1 %594  ;;  %v597_v40 = vpop.permute.xlu0 %596 }
 0x156   : > { %v603_v41 = vsel %vm602_vm2, %v595_v39, %v597_v40  ;;  %v610_v45 = vadd.f32 %v595_v39, %v578_v42 }
 0x157   : > { %v611_v43 = vadd.f32 %v603_v41, %v579_v38 }
 0x158   : > { %v620_v54 = vadd.f32 %v618_v31, %v610_v45 }
 0x159   : > { %v599_v46 = vpop.permute.xlu1 %598  ;;  %v570_v48 = vpop.permute.xlu0 %569  ;;  %v621_v49 = vadd.f32 %v618_v31, %v611_v43 }
 0x15a   : > { %v573_v50 = vsel %vm571_vm1, %v568_v33, %v570_v48  ;;  %v604_v53 = vsel %vm602_vm2, %v597_v40, %v599_v46  ;;  %v581_v55 = vadd.f32 %v570_v48, %v550_v51 }
 0x15b   : > { %v580_v52 = vadd.f32 %v573_v50, %v549_v47  ;;  %637 = vrot.lane.b32.xlu1 %v621_v49, %s1162_s17 }
 0x15d   : > { %v612_v56 = vadd.f32 %v604_v53, %v580_v52  ;;  %v601_v57 = vpop.permute.xlu0 %600 }
 0x15e   : > { %v605_v58 = vsel %vm602_vm2, %v599_v46, %v601_v57 }
 0x15f   : > { %v613_v59 = vadd.f32 %v605_v58, %v581_v55  ;;  %635 = vrot.lane.b32.xlu1 %v620_v54, %s1162_s17  ;;  %v622_v60 = vadd.f32 %v618_v31, %v612_v56 }
 0x161   : > { %639 = vrot.lane.b32.xlu0 %v622_v60, %s1162_s17  ;;  %v623_v62 = vadd.f32 %v618_v31, %v613_v59 }
 0x163   : > { %628 = vperm.xlu1 %1036, %v625_v61  }
 0x165   : > { %641 = vrot.lane.b32.xlu0 %v623_v62, %s1162_s17 }
 0x1cd   : > { %v638_v63 = vpop.permute.xlu1 %637 }
 0x1d1   : > { %v636_v0 = vpop.permute.xlu1 %635 }
 0x1d2   : > { %v644_v4 = vsel %vm643_vm4, %v636_v0, %v638_v63 }
 0x1d3   : > { %v640_v1 = vpop.permute.xlu0 %639 }
 0x1d4   : > { %v645_v2 = vsel %vm643_vm4, %v638_v63, %v640_v1 }
 0x1d5   : > { %654 = vmatprep.subr.mxu0 %v645_v2 }
 0x1d6   : > { %655 = vmatpush1.msra.mxu0 %v644_v4 }
 0x1d7   : > { %948 = vmatmul.mubr.msk.f32.vlgmr.msra.gmra.mrb[0].mxu0 %vm650_vm5, %v624_v3  ;;  %v642_v5 = vpop.permute.xlu0 %641 }
 0x1d8   : > { %v646_v6 = vsel %vm643_vm4, %v640_v1, %v642_v5 }
 0x1d9   : > { %957 = vmatpush3.msra.mxu1 %v646_v6 }
 0x1da   : > { %959 = vmatmul.mubr.msk.f32.vlgmr.msra.gmra.mrb[0].mxu1 %vm650_vm5, %v624_v3 }
 0x1e2   : > { %v629_v7 = vpop.permute.xlu1 %628 }
 0x2aa   : > { %v720_v8 = vpop.f32.mrb[0].mxu0 }
 0x2ab   : > { %v721_v9 = vadd.f32 %v720_v8, %v629_v7  ;;  %v722_v10 = vpop.f32.mrb[1].mxu0 }
 0x2ac   : > { %v723_v11 = vadd.f32 %v722_v10, %v629_v7 }
 0x2ad   : > { %795 = vst [vmem:[%s484_s20] sm:$0x3f] %v721_v9  ;;  %v791_v12 = vpop.f32.mrb[0].mxu1 }
 0x2ae   : > { %796 = vst [vmem:[%s484_s20 + $0x8] sm:$0x3f] %v723_v11  ;;  %v792_v13 = vadd.f32 %v791_v12, %v629_v7  ;;  %v960_v14 = vpop.f32.mrb[1].mxu1 }
 0x2b0   : > { %797 = vst [vmem:[%s484_s20 + $0x10] sm:$0x3f] %v792_v13 }
 0x2b1 PF: > { %s25_s14 = sadd.s32 1, %s1151_s14   ;;  %s1438_s30 = smov %s1135_s10 }
 0x2b2   : > { %p22_p9 = scmp.ge.s32.totalorder %s25_s14, 4   ;;  %s1439_s10 = smov %s1139_s11 }
 0x2b3   : > { %s1440_s11 = smov %s1262_s21  ;;  %s1441_s12 = smov %s1147_s13 }
 0x2b4   : > { %s1442_s13 = smov %s1444_s16  ;;  %24 = sbr.rel (!%p22_p9) target bundleno = 8 (0x8), region = 112 }
 0x2bb   :  { %828 = vsyncpa [#allocation3], 1 }
 0x2bc   :  { %830 = vsyncpa [#allocation3 + $0x1], 1 }
 0x2bd   :  { %831 = vsyncpa [#allocation5], 1 }
 0x2be   :  { %833 = vsyncpa [#allocation5 + $0x1], 1 }

</bundles_post_ra>
